<compile_context>
chip_gen: v7x
topology: tpu7x:2x2x1
jax: 0.10.0
libtpu: 0.0.40
codegen_flags: <defaults>
</compile_context>

<pallas_src>
import jax
import jax.numpy as jnp
from jax import lax
from jax.experimental import pallas as pl
from jax.experimental.pallas import tpu as pltpu


IN_FEATURES = 2
HIDDEN = 16
LANE = 128              # TPU lane width
CHUNK = 8192            # inner compute chunk (lanes): (16, CHUNK) f32 temp = 512 KiB
MAX_TB = 512 * 1024     # absolute safety cap on lanes per grid step


def _vmem_capacity_bytes():
    """Per-core VMEM capacity; conservative 64 MiB (v7x) fallback."""
    try:
        info = pltpu.get_tpu_info()
        cap = getattr(info, "vmem_capacity_bytes", None)
        if cap:
            return int(cap)
    except Exception:
        pass
    return 64 * 1024 * 1024


def _choose_tile(B):
    """Pick (batch_tile, inner_chunk, vmem_capacity) for a batch of B rows."""
    cap = _vmem_capacity_bytes()
    budget = cap // 2                      # headroom for compiler/internal scratch
    # Per-lane VMEM: x block (2,tb) padded to 8 sublanes, double-buffered (64 B) +
    # out block (1,tb) likewise (64 B) + slack  ->  ~160 B/lane.
    tb_cap = budget // 160
    tb_cap = min(MAX_TB, max(CHUNK, (tb_cap // CHUNK) * CHUNK))

    if B <= LANE:
        # Whole (tiny) batch in one block; block dims equal the array dims.
        return B, B, cap

    tb = min(tb_cap, pl.cdiv(B, LANE) * LANE)
    if tb >= B:
        # Keep >= 2 grid steps so the "parallel" axis can shard across TCs (v7x).
        tb = pl.cdiv(pl.cdiv(B, 2), LANE) * LANE
    if tb > CHUNK:
        tb = pl.cdiv(tb, CHUNK) * CHUNK    # inner chunk loop needs tb % CHUNK == 0
        chunk = CHUNK
    else:
        chunk = tb
    return tb, chunk, cap


def _vmem_limit_bytes(tb, chunk, cap):
    pipeline = 2 * 2 * (8 * tb * 4)        # x + out blocks, double-buffered, 8-sublane padded
    temps = 6 * HIDDEN * chunk * 4         # live f32 (16, chunk) intermediates (generous)
    need = pipeline + temps + (4 << 20)
    return int(min(max(need, 32 << 20), int(cap * 0.9)))


def _make_kernel(tb, chunk):
    n_chunks = tb // chunk

    def kernel(x_ref, w1_ref, b1_ref, w2_ref, b2_ref, o_ref):
        # x_ref:  (2,  tb)  -- batch on the lane axis (lane-dense)
        # w1_ref: (16, 2)   -- == PyTorch fc1.weight      (VMEM-resident)
        # b1_ref: (16, 1)   -- fc1.bias as a column        (VMEM-resident)
        # w2_ref: (16, 1)   -- == fc2.weight.T             (VMEM-resident)
        # b2_ref: (1, 1)    -- fc2.bias, scalar in SMEM
        # o_ref:  (1,  tb)
        w1 = w1_ref[...]
        b1 = b1_ref[...]
        w2 = w2_ref[...]
        b2 = b2_ref[0, 0]
        w10 = w1[:, 0:1]
        w11 = w1[:, 1:2]

        def compute(x):
            # Layer 1 (2 -> 16): K=2 is far too small for the MXU -> VPU broadcast FMAs.
            h = jnp.maximum(w10 * x[0:1, :] + w11 * x[1:2, :] + b1, 0.0)   # (16, c)
            # Layer 2 (16 -> 1): elementwise mul + sublane reduce (XLU); MXU stays idle.
            y = jnp.sum(h * w2, axis=0, keepdims=True) + b2                # (1, c)
            return jax.nn.sigmoid(y)                                       # exp on EUP

        if n_chunks == 1:
            o_ref[...] = compute(x_ref[...]).astype(o_ref.dtype)
        else:
            # Chunked compute: keeps the f32 (16, chunk) temporaries small so the
            # DMA tile (tb) can be sized purely for HBM amortization.
            def body(c, carry):
                start = pl.multiple_of(c * chunk, chunk)
                xs = x_ref[:, pl.ds(start, chunk)]
                o_ref[:, pl.ds(start, chunk)] = compute(xs).astype(o_ref.dtype)
                return carry

            lax.fori_loop(0, n_chunks, body, 0)

    return kernel


def simplenn_forward_lanes(xt, w1, b1, w2, b2):
    """Core entry: xt is (2, B) lane-dense float32. Returns (1, B) float32."""
    B = xt.shape[1]
    tb, chunk, cap = _choose_tile(B)
    grid = (pl.cdiv(B, tb),)

    flops = 2 * B * (IN_FEATURES * HIDDEN + HIDDEN)
    bytes_accessed = (B * (IN_FEATURES + 1) * 4
                      + grid[0] * (HIDDEN * IN_FEATURES + 2 * HIDDEN + 1) * 4)

    return pl.pallas_call(
        _make_kernel(tb, chunk),
        out_shape=jax.ShapeDtypeStruct((1, B), jnp.float32),
        grid=grid,
        in_specs=[
            # x: tiled along the lane/batch axis; partial last block is edge-masked.
            pl.BlockSpec((IN_FEATURES, tb), lambda i: (0, i)),
            # Weights / b1: constant block index -> stay VMEM-resident across steps.
            pl.BlockSpec((HIDDEN, IN_FEATURES), lambda i: (0, 0)),
            pl.BlockSpec((HIDDEN, 1), lambda i: (0, 0)),
            pl.BlockSpec((HIDDEN, 1), lambda i: (0, 0)),
            # b2: a single scalar -> SMEM, no VMEM pipeline slot.
            pl.BlockSpec(memory_space=pltpu.MemorySpace.SMEM),
        ],
        out_specs=pl.BlockSpec((1, tb), lambda i: (0, i)),
        compiler_params=pltpu.CompilerParams(
            dimension_semantics=("parallel",),               # 2-TC sharding on v7x
            vmem_limit_bytes=_vmem_limit_bytes(tb, chunk, cap)),
        cost_estimate=pl.CostEstimate(
            flops=flops, transcendentals=B, bytes_accessed=bytes_accessed),
    )(xt, w1, b1, w2, b2)


def simplenn_forward(x, w1, b1, w2, b2):
    """PyTorch-layout entry: x (B, 2) float32 -> (B, 1) float32.

    The x.T below is one extra HBM pass over the input; producers that can emit
    the (2, B) layout should call simplenn_forward_lanes directly to avoid it.
    """
    B = x.shape[0]
    out = simplenn_forward_lanes(x.T.astype(jnp.float32), w1, b1, w2, b2)
    return out.reshape(B, 1)   # (1,B) -> (B,1): contiguous, metadata-only reshape


def init_params(key):
    """Deterministic init mirroring PyTorch nn.Linear default U[-1/sqrt(fan_in), +]."""
    k1, k2, k3, k4 = jax.random.split(key, 4)
    bound1 = 1.0 / jnp.sqrt(2.0)    # fc1: in_features = 2
    bound2 = 1.0 / jnp.sqrt(16.0)   # fc2: in_features = 16
    w1 = jax.random.uniform(k1, (HIDDEN, IN_FEATURES), jnp.float32, -bound1, bound1)  # fc1.weight
    b1 = jax.random.uniform(k2, (HIDDEN, 1), jnp.float32, -bound1, bound1)            # fc1.bias
    w2 = jax.random.uniform(k3, (HIDDEN, 1), jnp.float32, -bound2, bound2)            # fc2.weight.T
    b2 = jax.random.uniform(k4, (1, 1), jnp.float32, -bound2, bound2)                 # fc2.bias
    return w1, b1, w2, b2


def reference(x, w1, b1, w2, b2):
    h = jnp.maximum(x @ w1.T + b1.reshape(1, -1), 0.0)
    return jax.nn.sigmoid(h @ w2 + b2.reshape(1, 1))


if __name__ == "__main__":
    key = jax.random.PRNGKey(0)
    pkey, xkey1, xkey2, xkey3 = jax.random.split(key, 4)
    w1, b1, w2, b2 = init_params(pkey)

    fwd = jax.jit(simplenn_forward)

    # Tiny batch: single block whose dims equal the array dims.
    x_small = jax.random.normal(xkey1, (8, 2), dtype=jnp.float32)
    out_small = jax.block_until_ready(fwd(x_small, w1, b1, w2, b2))
    ref_small = reference(x_small, w1, b1, w2, b2)
    assert out_small.shape == (8, 1)
    assert jnp.allclose(out_small, ref_small, atol=1e-5), "mismatch vs reference (B=8)"

    # Medium batch: 2 grid steps + edge-masked (unpadded) final block.
    x_mid = jax.random.normal(xkey2, (1000, 2), dtype=jnp.float32)
    out_mid = jax.block_until_ready(fwd(x_mid, w1, b1, w2, b2))
    ref_mid = reference(x_mid, w1, b1, w2, b2)
    assert out_mid.shape == (1000, 1)
    assert jnp.allclose(out_mid, ref_mid, atol=1e-5), "mismatch vs reference (B=1000)"

    # Larger batch: exercises the inner chunked fori_loop path as well.
    x_big = jax.random.normal(xkey3, (20000, 2), dtype=jnp.float32)
    out_big = jax.block_until_ready(fwd(x_big, w1, b1, w2, b2))
    ref_big = reference(x_big, w1, b1, w2, b2)
    assert out_big.shape == (20000, 1)
    assert jnp.allclose(out_big, ref_big, atol=1e-5), "mismatch vs reference (B=20000)"

    print("KERNEL_OK")
</pallas_src>

<mosaic_0001>
module attributes {stable_mosaic.version = 11 : i64} {
  func.func @kernel(%arg0: i32, %arg1: memref<2x8xf32, #tpu.memory_space<vmem>>, %arg2: memref<16x2xf32, #tpu.memory_space<vmem>>, %arg3: memref<16x1xf32, #tpu.memory_space<vmem>>, %arg4: memref<16x1xf32, #tpu.memory_space<vmem>>, %arg5: memref<1x1xf32, #tpu.memory_space<smem>>, %arg6: memref<1x8xf32, #tpu.memory_space<vmem>>) attributes {dimension_semantics = [#tpu.dimension_semantics<parallel>], iteration_bounds = array<i64: 1>, scalar_prefetch = 0 : i64, scratch_operands = 0 : i64, tpu.core_type = #tpu.core_type<tc>, window_params = [{transform_indices = @transform_0, window_bounds = array<i64: 2, 8>}, {pipeline_mode = #tpu.pipeline_mode<synchronous>, transform_indices = @transform_1, window_bounds = array<i64: 16, 2>}, {pipeline_mode = #tpu.pipeline_mode<synchronous>, transform_indices = @transform_2, window_bounds = array<i64: 16, 1>}, {pipeline_mode = #tpu.pipeline_mode<synchronous>, transform_indices = @transform_3, window_bounds = array<i64: 16, 1>}, {transform_indices = @transform_4, window_bounds = array<i64: 1, 1>}, {transform_indices = @transform_5, window_bounds = array<i64: 1, 8>}]} {
    %c0 = arith.constant 0 : index
    %c0_0 = arith.constant 0 : index
    %0 = vector.load %arg2[%c0, %c0_0] : memref<16x2xf32, #tpu.memory_space<vmem>>, vector<16x2xf32>
    %c0_1 = arith.constant 0 : index
    %c0_2 = arith.constant 0 : index
    %1 = vector.load %arg3[%c0_1, %c0_2] : memref<16x1xf32, #tpu.memory_space<vmem>>, vector<16x1xf32>
    %c0_3 = arith.constant 0 : index
    %c0_4 = arith.constant 0 : index
    %2 = vector.load %arg4[%c0_3, %c0_4] : memref<16x1xf32, #tpu.memory_space<vmem>>, vector<16x1xf32>
    %c0_5 = arith.constant 0 : index
    %c0_6 = arith.constant 0 : index
    %3 = memref.load %arg5[%c0_5, %c0_6] : memref<1x1xf32, #tpu.memory_space<smem>>
    %4 = vector.extract_strided_slice %0 {offsets = [0, 0], sizes = [16, 1], strides = [1, 1]} : vector<16x2xf32> to vector<16x1xf32>
    %5 = vector.extract_strided_slice %0 {offsets = [0, 1], sizes = [16, 1], strides = [1, 1]} : vector<16x2xf32> to vector<16x1xf32>
    %c0_7 = arith.constant 0 : index
    %c0_8 = arith.constant 0 : index
    %6 = vector.load %arg1[%c0_7, %c0_8] : memref<2x8xf32, #tpu.memory_space<vmem>>, vector<2x8xf32>
    %7 = vector.extract_strided_slice %6 {offsets = [0, 0], sizes = [1, 8], strides = [1, 1]} : vector<2x8xf32> to vector<1x8xf32>
    %8 = vector.broadcast %4 : vector<16x1xf32> to vector<16x8xf32>
    %9 = vector.broadcast %7 : vector<1x8xf32> to vector<16x8xf32>
    %10 = arith.mulf %8, %9 : vector<16x8xf32>
    %11 = vector.extract_strided_slice %6 {offsets = [1, 0], sizes = [1, 8], strides = [1, 1]} : vector<2x8xf32> to vector<1x8xf32>
    %12 = vector.broadcast %5 : vector<16x1xf32> to vector<16x8xf32>
    %13 = vector.broadcast %11 : vector<1x8xf32> to vector<16x8xf32>
    %14 = arith.mulf %12, %13 : vector<16x8xf32>
    %15 = arith.addf %10, %14 : vector<16x8xf32>
    %16 = vector.broadcast %1 : vector<16x1xf32> to vector<16x8xf32>
    %17 = arith.addf %15, %16 : vector<16x8xf32>
    %cst = arith.constant 0.000000e+00 : f32
    %18 = vector.broadcast %cst : f32 to vector<16x8xf32>
    %19 = arith.maximumf %17, %18 : vector<16x8xf32>
    %20 = vector.broadcast %2 : vector<16x1xf32> to vector<16x8xf32>
    %21 = arith.mulf %19, %20 : vector<16x8xf32>
    %cst_9 = arith.constant dense<0.000000e+00> : vector<8xf32>
    %22 = vector.multi_reduction <add>, %21, %cst_9 [0] : vector<16x8xf32> to vector<8xf32>
    %23 = vector.shape_cast %22 : vector<8xf32> to vector<1x8xf32>
    %24 = vector.broadcast %3 : f32 to vector<1x8xf32>
    %25 = arith.addf %23, %24 : vector<1x8xf32>
    %26 = arith.negf %25 : vector<1x8xf32>
    %27 = math.exp %26 : vector<1x8xf32>
    %cst_10 = arith.constant 1.000000e+00 : f32
    %28 = vector.broadcast %cst_10 : f32 to vector<1x8xf32>
    %29 = arith.addf %28, %27 : vector<1x8xf32>
    %30 = arith.divf %28, %29 : vector<1x8xf32>
    %c0_11 = arith.constant 0 : index
    %c0_12 = arith.constant 0 : index
    %31 = vector.load %arg6[%c0_11, %c0_12] : memref<1x8xf32, #tpu.memory_space<vmem>>, vector<1x8xf32>
    tpu.vector_store %arg6[%c0_11, %c0_12], %30 {strides = array<i32>} : memref<1x8xf32, #tpu.memory_space<vmem>>, vector<1x8xf32>,
    return
  }
  func.func @transform_0(%arg0: i32) -> (i32, i32) {
    %c0_i32 = arith.constant 0 : i32
    %c0_i32_0 = arith.constant 0 : i32
    return %c0_i32, %arg0 : i32, i32
  }
  func.func @transform_1(%arg0: i32) -> (i32, i32) {
    %c0_i32 = arith.constant 0 : i32
    %c0_i32_0 = arith.constant 0 : i32
    %c0_i32_1 = arith.constant 0 : i32
    return %c0_i32, %c0_i32_0 : i32, i32
  }
  func.func @transform_2(%arg0: i32) -> (i32, i32) {
    %c0_i32 = arith.constant 0 : i32
    %c0_i32_0 = arith.constant 0 : i32
    %c0_i32_1 = arith.constant 0 : i32
    return %c0_i32, %c0_i32_0 : i32, i32
  }
  func.func @transform_3(%arg0: i32) -> (i32, i32) {
    %c0_i32 = arith.constant 0 : i32
    %c0_i32_0 = arith.constant 0 : i32
    %c0_i32_1 = arith.constant 0 : i32
    return %c0_i32, %c0_i32_0 : i32, i32
  }
  func.func @transform_4(%arg0: i32) -> (i32, i32) {
    %c0_i32 = arith.constant 0 : i32
    %c0_i32_0 = arith.constant 0 : i32
    %c0_i32_1 = arith.constant 0 : i32
    return %c0_i32, %c0_i32_0 : i32, i32
  }
  func.func @transform_5(%arg0: i32) -> (i32, i32) {
    %c0_i32 = arith.constant 0 : i32
    %c0_i32_0 = arith.constant 0 : i32
    return %c0_i32, %arg0 : i32, i32
  }
}

</mosaic_0001>

<bundles_post_ra>
// kernel: simplenn_forward.1
= control target key start
LH: loop header
LB: loop body
LE: loop exit
PB: predicated region body
PF: predicated region fallthrough
CT: control target
= control target key end

     0   :  { %v157_v1 = vmov 1   ;;  %v158_v2 = vmov 0   ;;  %s226_s0 = inlined_call_operand.vmem [shape: f32[2,8], index: 0, kind: input, shape index: {}]   ;;  %s227_s1 = inlined_call_operand.vmem [shape: f32[16,2], index: 1, kind: input, shape index: {}]   ;;  %s228_s2 = inlined_call_operand.vmem [shape: f32[16,1], index: 2, kind: input, shape index: {}]   ;;  %s229_s3 = inlined_call_operand.vmem [shape: f32[16,1], index: 3, kind: input, shape index: {}]   ;;  %s230_s4 = inlined_call_operand.<no memory space> [shape: f32[1,1], index: 4, kind: input, shape index: {}]   ;;  %s231_s5 = inlined_call_operand.hbm [shape: f32[1,8], index: 5, kind: output, shape index: {}]  }
   0x1   :  { %v22_v0 = vld [vmem:[%s227_s1] sm:$0xff]  ;;  %127 = vset.pattern.permute.xlu1 %v157_v1  ;;  %126 = vset.pattern.permute.xlu0 %v158_v2 }
   0x2   :  { %47 = vperm.xlu1 %127, %v22_v0   ;;  %32 = vperm.xlu0 %126, %v22_v0  }
   0x3   :  { %11 = vsyncpa [#allocation4], 0  ;;  %v23_v3 = vld [vmem:[%s227_s1 + $0x8] sm:$0xff]  ;;  %v24_v4 = vld [vmem:[%s228_s2] sm:$0xff]  ;;  %v40_v8 = vlaneseq  ;;  %vm88_vm0 = vcmask 64512   ;;  %v98_v43 = vstv %s230_s4  ;;  %vm106_vm1 = vcmask 57344  }
   0x4   :  { %v25_v5 = vld [vmem:[%s228_s2 + $0x8] sm:$0xff]  ;;  %v26_v6 = vld [vmem:[%s229_s3] sm:$0xff] }
   0x5   :  { %v27_v7 = vld [vmem:[%s229_s3 + $0x8] sm:$0xff]  ;;  %v41_v9 = vshrl.u32 %v40_v8, 7  ;;  %v29_v12 = vld [vmem:[%s226_s0] sm:$0x3]  ;;  %s159_s3 = smov [#allocation3]  }
   0x6   :  { %51 = vperm.xlu1 %127, %v23_v3   ;;  %37 = vperm.xlu0 %126, %v23_v3   ;;  %s114_s6 = sshll.u32 %s159_s3, 4  ;;  %s115_s6 = int_to_ptr.vmem [resolvable:$true] %s114_s6 }
   0x7   :  { %v56_v10 = vsub.s32 1, %v41_v9  ;;  %v42_v11 = vsub.s32 0, %v41_v9  ;;  %s133_s7 = scalar_lea.vmem %s115_s6, 16  ;;  %s137_s8 = scalar_lea.vmem %s115_s6, 32 }
   0x8   :  { %p134_p0 = scmp.ne.s32.totalorder %s115_s6, %s133_s7  ;;  %p138_p1 = scmp.lt.s32.totalorder %s115_s6, %s115_s6 }
   0x9   :  { %v57_v13 = vrot.slane %v29_v12, %v56_v10  ;;  %v43_v14 = vrot.slane %v29_v12, %v42_v11  ;;  %p139_p2 = scmp.lt.s32.totalorder %s137_s8, %s133_s7 }
   0xa   :  { %128 = vset.pattern.permute.xlu1 %v158_v2  ;;  %64 = vperm.xlu0 %126, %v24_v4  }
   0xb   :  { %69 = vperm.xlu1 %128, %v25_v5   ;;  %p140_p3 = por %p139_p2, %p138_p1 }
   0xd   :  { %p141_p4 = pnand %p140_p3, %p134_p0 }
   0xe   :  { %78 = vperm.xlu0 %126, %v26_v6  }
   0xf   :  { %83 = vperm.xlu1 %128, %v27_v7  }
  0x81   :  { %v48_v15 = vpop.permute.xlu1 %47  ;;  %v33_v16 = vpop.permute.xlu0 %32 }
  0x82   :  { %v58_v17 = vmul.f32 %v57_v13, %v48_v15  ;;  %v44_v18 = vmul.f32 %v43_v14, %v33_v16 }
  0x84   :  { %v60_v23 = vadd.f32 %v58_v17, %v44_v18 }
  0x85   :  { %v52_v19 = vpop.permute.xlu1 %51  ;;  %v38_v20 = vpop.permute.xlu0 %37 }
  0x86   :  { %v59_v21 = vmul.f32 %v57_v13, %v52_v19  ;;  %v45_v22 = vmul.f32 %v43_v14, %v38_v20 }
  0x88   :  { %v61_v24 = vadd.f32 %v59_v21, %v45_v22 }
  0x89   :  { %v65_v25 = vpop.permute.xlu0 %64 }
  0x8a   :  { %v72_v26 = vadd.f32 %v65_v25, %v60_v23  ;;  %v70_v27 = vpop.permute.xlu1 %69 }
  0x8b   :  { %v73_v28 = vadd.f32 %v70_v27, %v61_v24 }
  0x8c   :  { %v74_v29 = vmax.f32 %v72_v26, 0.0 }
  0x8d   :  { %v75_v30 = vmax.f32 %v73_v28, 0.0  ;;  %v79_v31 = vpop.permute.xlu0 %78 }
  0x8e   :  { %v86_v32 = vmul.f32 %v79_v31, %v74_v29  ;;  %v84_v33 = vpop.permute.xlu1 %83 }
  0x8f   :  { %v87_v34 = vmul.f32 %v84_v33, %v75_v30 }
  0x90   :  { %v89_v35 = vsel %vm88_vm0, %v86_v32, 0.0 }
  0x91   :  { %v90_v36 = vsel %vm88_vm0, %v87_v34, 0.0 }
  0x92   :  { %v91_v37 = vadd.f32 %v90_v36, %v89_v35 }
  0x94   :  { %v92_v38 = vrot.slane %v91_v37, 4 }
  0x96   :  { %v93_v39 = vadd.f32 %v92_v38, %v91_v37 }
  0x98   :  { %v94_v40 = vrot.slane %v93_v39, 2 }
  0x9a   :  { %v95_v41 = vadd.f32 %v94_v40, %v93_v39 }
  0x9c   :  { %v96_v42 = vrot.slane %v95_v41, 1 }
  0x9e   :  { %v97_v44 = vadd.f32 %v96_v42, %v95_v41 }
  0xa0   :  { %v99_v45 = vadd.f32 %v98_v43, %v97_v44 }
  0xa2   :  { %v122_v46 = vmul.f32 -1.442695, %v99_v45 }
  0xa4   :  { %129 = vpow2.f32 %v122_v46 }
  0xae   :  { %v130_v47 = vpop.eup %129 }
  0xaf   :  { %v103_v48 = vadd.f32 1.0, %v130_v47 }
  0xb1   :  { %131 = vrcp.f32 %v103_v48 }
  0xbb   :  { %v132_v49 = vpop.eup %131 }
  0xbc   :  { %107 = vst.msk [vmem:[#allocation3] sm:$0x1] %vm106_vm1, %v132_v49 }
  0xbd   :  { %144 = shalt.err (!%p141_p4)
}
  0xbe   :  { %s145_s10 = scalar_lea.hbm %s231_s5, 16 }
  0xbf   :  { %p146_p5 = scmp.ne.s32.totalorder %s231_s5, %s145_s10  ;;  %p149_p6 = scmp.lt.u32.totalorder %s145_s10, %s231_s5 }
  0xc1   :  { %p151_p7 = pnand %p149_p6, %p146_p5 }
  0xc3   :  { %154 = shalt.err (!%p151_p7)
}
  0xc4   :  { %117 = dma.vmem_to_hbm [thread:$0]  %s115_s6, 16, %s231_s5, [#allocation4]  }
  0xc5   :  { %155 = dma.done.wait [#allocation4], 16  }
  0xc6   :  { %156 = vsyncadd [#allocation4], 4294967280 }
  0xc7   :  { %121 = vsyncpa [#allocation4], 1 }

</bundles_post_ra>
